<compile_context>
chip_gen: v7x
topology: tpu7x:2x2x1
jax: 0.10.0
libtpu: 0.0.40
codegen_flags: <defaults>
</compile_context>

<pallas_src>
import functools

import jax
import jax.numpy as jnp
from jax.experimental import pallas as pl
from jax.experimental.pallas import tpu as pltpu


def _round_up(x, m):
    return (x + m - 1) // m * m


def _fused_conv1d_relu_kernel(x_ref, w_ref, b_ref, o_ref, *, max_k, l_o_pad):
    # x_ref: (Bn, C_in, L_x_pad)              bf16
    # w_ref: (num_fs*C_out_pad, max_k*C_in)   bf16   (taps >= fs are zero)
    # b_ref: (num_fs*C_out_pad, 1)            f32
    # o_ref: (Bn, num_fs*C_out_pad, L_o_pad)  f32
    bn = o_ref.shape[0]
    w = w_ref[...]
    b = b_ref[...]
    for bi in range(bn):                      # small static unroll over batch
        x_b = x_ref[bi]                       # (C_in, L_x_pad)
        # im2col RHS: max_k shifted copies of x stacked on the contraction
        # axis, built once and shared by every filter size.
        rhs = jnp.concatenate(
            [x_b[:, k:k + l_o_pad] for k in range(max_k)], axis=0)
        acc = jnp.dot(w, rhs, preferred_element_type=jnp.float32)
        o_ref[bi] = jnp.maximum(acc + b, 0.0).astype(o_ref.dtype)


def conv1d_relu_fused(x, weights, biases, filter_sizes):
    """Fused relu(conv1d(x, w_fs, b_fs)) for every filter size.

    x: (N, C_in, L) f32.  weights[i]: (C_out, C_in, fs_i).  biases[i]: (C_out,).
    Returns a list of (N, C_out, L - fs_i + 1) f32 arrays.
    """
    n, c_in, l = x.shape
    c_out = weights[0].shape[0]
    num_fs = len(filter_sizes)
    max_k = max(filter_sizes)
    min_k = min(filter_sizes)
    for w, fs in zip(weights, filter_sizes):
        assert w.shape == (c_out, c_in, fs), w.shape

    c_out_pad = _round_up(c_out, 8)             # sublane-aligned output rows
    o_total = num_fs * c_out_pad
    kc = max_k * c_in                           # fused contraction width
    l_o_pad = _round_up(l - min_k + 1, 128)     # lane-dense output length
    l_x_pad = _round_up(l_o_pad + max_k - 1, 128)

    # --- batch blocking -----------------------------------------------------
    bn = min(8, n)
    if n > 1 and n // bn < 2:                   # keep >= 2 parallel grid steps
        bn = max(1, n // 2)
    n_pad = _round_up(n, bn)

    # --- pack / pad operands (wrapper-side layout plumbing) ------------------
    x_pad = jnp.zeros((n_pad, c_in, l_x_pad), jnp.float32)
    x_pad = x_pad.at[:n, :, :l].set(x)
    x_pad = x_pad.astype(jnp.bfloat16)

    w_all = jnp.zeros((o_total, kc), jnp.float32)
    b_all = jnp.zeros((o_total, 1), jnp.float32)
    for fi, (w, b, fs) in enumerate(zip(weights, biases, filter_sizes)):
        # (C_out, C_in, fs) -> (C_out, fs, C_in) -> (C_out, fs*C_in):
        # tap-major contraction layout matching the im2col RHS in the kernel.
        w2 = jnp.transpose(w, (0, 2, 1)).reshape(c_out, fs * c_in)
        w_all = w_all.at[fi * c_out_pad:fi * c_out_pad + c_out, :fs * c_in].set(w2)
        b_all = b_all.at[fi * c_out_pad:fi * c_out_pad + c_out, 0].set(b)
    w_all = w_all.astype(jnp.bfloat16)

    grid = (n_pad // bn,)
    kernel = functools.partial(_fused_conv1d_relu_kernel,
                               max_k=max_k, l_o_pad=l_o_pad)

    flops = 2 * n_pad * o_total * kc * l_o_pad
    bytes_accessed = (x_pad.size * 2 + w_all.size * 2 + b_all.size * 4
                      + n_pad * o_total * l_o_pad * 4)
    cost = pl.CostEstimate(flops=flops, transcendentals=0,
                           bytes_accessed=bytes_accessed)

    # Per-step VMEM: double-buffered x + out blocks, plus resident w / b.
    block_bytes = (2 * bn * c_in * l_x_pad * 2
                   + 2 * bn * o_total * l_o_pad * 4
                   + o_total * kc * 2 + o_total * 128 * 4)
    vmem_limit = int(min(max(32 << 20, 2 * block_bytes), 64 << 20))

    out = pl.pallas_call(
        kernel,
        out_shape=jax.ShapeDtypeStruct((n_pad, o_total, l_o_pad), jnp.float32),
        grid_spec=pltpu.PrefetchScalarGridSpec(
            num_scalar_prefetch=0,
            grid=grid,
            in_specs=[
                pl.BlockSpec((bn, c_in, l_x_pad), lambda i: (i, 0, 0)),
                pl.BlockSpec((o_total, kc), lambda i: (0, 0)),
                pl.BlockSpec((o_total, 1), lambda i: (0, 0)),
            ],
            out_specs=pl.BlockSpec((bn, o_total, l_o_pad), lambda i: (i, 0, 0)),
        ),
        compiler_params=pltpu.CompilerParams(
            dimension_semantics=("parallel",),
            vmem_limit_bytes=vmem_limit),
        cost_estimate=cost,
    )(x_pad, w_all, b_all)

    outs = []
    for fi, fs in enumerate(filter_sizes):
        l_out = l - fs + 1
        outs.append(out[:n, fi * c_out_pad:fi * c_out_pad + c_out, :l_out])
    return outs


class Conv1dPallas:
    """Mirror of the PyTorch Conv1d module (list of conv1d + relu), fused."""

    def __init__(self, in_channels, out_channels, filter_sizes, key):
        self.filter_sizes = tuple(filter_sizes)
        self.weights = []
        self.biases = []
        for fs in self.filter_sizes:
            key, sub = jax.random.split(key)
            # Xavier uniform for Conv1d weight (out, in, k):
            #   fan_in = in*k, fan_out = out*k, bound = sqrt(6/(fan_in+fan_out))
            fan_in = in_channels * fs
            fan_out = out_channels * fs
            bound = (6.0 / (fan_in + fan_out)) ** 0.5
            w = jax.random.uniform(sub, (out_channels, in_channels, fs),
                                   jnp.float32, minval=-bound, maxval=bound)
            b = jnp.full((out_channels,), 0.1, jnp.float32)
            self.weights.append(w)
            self.biases.append(b)

    def __call__(self, x):
        return conv1d_relu_fused(x, self.weights, self.biases, self.filter_sizes)


if __name__ == "__main__":
    key = jax.random.PRNGKey(0)
    k_x, k_params = jax.random.split(key)

    batch, in_channels, out_channels, length = 2, 4, 8, 16
    filter_sizes = (2, 3, 4)

    x = jax.random.normal(k_x, (batch, in_channels, length), jnp.float32)

    model = Conv1dPallas(in_channels, out_channels, filter_sizes, k_params)
    outs = model(x)
    outs = [jax.block_until_ready(o) for o in outs]

    # Reference: the kernel feeds the MXU bf16 operands with f32 accumulation,
    # so compare against an f32 lax.conv of the bf16-rounded inputs.
    x_q = x.astype(jnp.bfloat16).astype(jnp.float32)
    for w, b, o, fs in zip(model.weights, model.biases, outs, filter_sizes):
        w_q = w.astype(jnp.bfloat16).astype(jnp.float32)
        ref = jax.lax.conv_general_dilated(
            x_q, w_q, window_strides=(1,), padding="VALID",
            dimension_numbers=("NCH", "OIH", "NCH"))
        ref = jnp.maximum(ref + b[None, :, None], 0.0)
        assert o.shape == (batch, out_channels, length - fs + 1), o.shape
        err = jnp.max(jnp.abs(o - ref))
        assert jnp.allclose(o, ref, atol=1e-4, rtol=1e-4), (
            f"mismatch for filter size {fs}: max err {err}")

    print("KERNEL_OK")
</pallas_src>

<mosaic_0001>
module attributes {stable_mosaic.version = 11 : i64} {
  func.func @_fused_conv1d_relu_kernel(%arg0: i32, %arg1: memref<1x4x256xbf16, #tpu.memory_space<vmem>>, %arg2: memref<24x16xbf16, #tpu.memory_space<vmem>>, %arg3: memref<24x1xf32, #tpu.memory_space<vmem>>, %arg4: memref<1x24x128xf32, #tpu.memory_space<vmem>>) attributes {dimension_semantics = [#tpu.dimension_semantics<parallel>], iteration_bounds = array<i64: 2>, scalar_prefetch = 0 : i64, scratch_operands = 0 : i64, tpu.core_type = #tpu.core_type<tc>, window_params = [{transform_indices = @transform_0, window_bounds = array<i64: 1, 4, 256>}, {pipeline_mode = #tpu.pipeline_mode<synchronous>, transform_indices = @transform_1, window_bounds = array<i64: 24, 16>}, {pipeline_mode = #tpu.pipeline_mode<synchronous>, transform_indices = @transform_2, window_bounds = array<i64: 24, 1>}, {transform_indices = @transform_3, window_bounds = array<i64: 1, 24, 128>}]} {
    %c0 = arith.constant 0 : index
    %c0_0 = arith.constant 0 : index
    %0 = vector.load %arg2[%c0, %c0_0] : memref<24x16xbf16, #tpu.memory_space<vmem>>, vector<24x16xbf16>
    %c0_1 = arith.constant 0 : index
    %c0_2 = arith.constant 0 : index
    %1 = vector.load %arg3[%c0_1, %c0_2] : memref<24x1xf32, #tpu.memory_space<vmem>>, vector<24x1xf32>
    %c0_3 = arith.constant 0 : index
    %c0_4 = arith.constant 0 : index
    %c0_5 = arith.constant 0 : index
    %2 = vector.load %arg1[%c0_3, %c0_4, %c0_5] : memref<1x4x256xbf16, #tpu.memory_space<vmem>>, vector<1x4x256xbf16>
    %3 = vector.shape_cast %2 : vector<1x4x256xbf16> to vector<4x256xbf16>
    %4 = vector.extract_strided_slice %3 {offsets = [0, 0], sizes = [4, 128], strides = [1, 1]} : vector<4x256xbf16> to vector<4x128xbf16>
    %5 = vector.extract_strided_slice %3 {offsets = [0, 1], sizes = [4, 128], strides = [1, 1]} : vector<4x256xbf16> to vector<4x128xbf16>
    %6 = vector.extract_strided_slice %3 {offsets = [0, 2], sizes = [4, 128], strides = [1, 1]} : vector<4x256xbf16> to vector<4x128xbf16>
    %7 = vector.extract_strided_slice %3 {offsets = [0, 3], sizes = [4, 128], strides = [1, 1]} : vector<4x256xbf16> to vector<4x128xbf16>
    %8 = tpu.concatenate %4, %5, %6, %7 in 0 : vector<4x128xbf16>, vector<4x128xbf16>, vector<4x128xbf16>, vector<4x128xbf16> -> vector<16x128xbf16>
    %cst = arith.constant dense<0.000000e+00> : vector<24x128xf32>
    %9 = tpu.matmul %0, %8, %cst {dimension_numbers = #tpu.dot_dimension_numbers<[1], [0], [0], [1], [0, 0, 1, 1], [], []>} : vector<24x16xbf16>, vector<16x128xbf16>, vector<24x128xf32> -> vector<24x128xf32>
    %10 = vector.broadcast %1 : vector<24x1xf32> to vector<24x128xf32>
    %11 = arith.addf %9, %10 : vector<24x128xf32>
    %cst_6 = arith.constant 0.000000e+00 : f32
    %12 = vector.broadcast %cst_6 : f32 to vector<24x128xf32>
    %13 = arith.maximumf %11, %12 : vector<24x128xf32>
    %c0_7 = arith.constant 0 : index
    %c0_8 = arith.constant 0 : index
    %c0_9 = arith.constant 0 : index
    %14 = vector.load %arg4[%c0_7, %c0_8, %c0_9] : memref<1x24x128xf32, #tpu.memory_space<vmem>>, vector<1x24x128xf32>
    %15 = vector.shape_cast %14 : vector<1x24x128xf32> to vector<24x128xf32>
    %16 = vector.shape_cast %13 : vector<24x128xf32> to vector<1x24x128xf32>
    tpu.vector_store %arg4[%c0_7, %c0_8, %c0_9], %16 {strides = array<i32>} : memref<1x24x128xf32, #tpu.memory_space<vmem>>, vector<1x24x128xf32>,
    return
  }
  func.func @transform_0(%arg0: i32) -> (i32, i32, i32) {
    %c0_i32 = arith.constant 0 : i32
    %c0_i32_0 = arith.constant 0 : i32
    %c0_i32_1 = arith.constant 0 : i32
    return %arg0, %c0_i32, %c0_i32_0 : i32, i32, i32
  }
  func.func @transform_1(%arg0: i32) -> (i32, i32) {
    %c0_i32 = arith.constant 0 : i32
    %c0_i32_0 = arith.constant 0 : i32
    %c0_i32_1 = arith.constant 0 : i32
    return %c0_i32, %c0_i32_0 : i32, i32
  }
  func.func @transform_2(%arg0: i32) -> (i32, i32) {
    %c0_i32 = arith.constant 0 : i32
    %c0_i32_0 = arith.constant 0 : i32
    %c0_i32_1 = arith.constant 0 : i32
    return %c0_i32, %c0_i32_0 : i32, i32
  }
  func.func @transform_3(%arg0: i32) -> (i32, i32, i32) {
    %c0_i32 = arith.constant 0 : i32
    %c0_i32_0 = arith.constant 0 : i32
    %c0_i32_1 = arith.constant 0 : i32
    return %arg0, %c0_i32, %c0_i32_0 : i32, i32, i32
  }
}

</mosaic_0001>

<bundles_post_ra>
// kernel: tpu_custom_call.1
= control target key start
LH: loop header
LB: loop body
LE: loop exit
PB: predicated region body
PF: predicated region fallthrough
CT: control target
= control target key end

     0   :  { %8 = vsyncpa [#allocation3], 0  ;;  %s673_s0 = inlined_call_operand.vmem [shape: bf16[2,4,256], index: 0, kind: input, shape index: {}]   ;;  %s674_s1 = inlined_call_operand.vmem [shape: bf16[24,16], index: 1, kind: input, shape index: {}]   ;;  %s675_s2 = inlined_call_operand.vmem [shape: f32[24,1], index: 2, kind: input, shape index: {}]   ;;  %s676_s3 = inlined_call_operand.hbm [shape: f32[2,24,128], index: 3, kind: output, shape index: {}]  }
   0x1   :  { %10 = vsyncpa [#allocation3 + $0x1], 0  ;;  %s553_s12 = smov 0   ;;  %s555_s13 = smov 0  }
   0x2   :  { %s557_s14 = smov 0   ;;  %s559_s15 = smov 0  }
   0x3 LB: > { %s574_s16 = sadd.s32 4294967295, %s523_s15   ;;  %s385_s17 = sadd.s32 4294967294, %s523_s15   ;;  %s523_s15 = sphi %s559_s15, %s682_s15   ;;  %s519_s14 = sphi %s557_s14, %s681_s14   ;;  %s515_s13 = sphi %s555_s13, %s680_s13   ;;  %s511_s12 = sphi %s553_s12, %s679_s12  }
   0x4   : > { %s578_s18 = sadd.s32 1, %s523_s15   ;;  %s91_s19 = sadd.s32 1, %s519_s14 }
   0x5   : > { %s88_s20 = ssub.s32 %s523_s15, %s578_s18  ;;  %p101_p0 = scmp.ne.s32.totalorder %s519_s14, %s515_s13 }
   0x6   : > { %p89_p1 = scmp.eq.s32.totalorder %s88_s20, 0  ;;  %p102_p2 = scmp.eq.s32.totalorder %s574_s16, 1 }
   0x7   : > { %p107_p3 = scmp.ne.s32.totalorder %s515_s13, %s511_s12  ;;  %p108_p4 = scmp.eq.s32.totalorder %s385_s17, 1 }
   0x8   : > { %s589_s21 = scalar_select %p89_p1, %s519_s14, %s91_s19  }
   0x9   : > { %p591_p5 = por %p102_p2, %p101_p0  ;;  %p595_p6 = por %p108_p4, %p107_p3 }
   0xa   : > { %p388_p7 = scmp.ge.s32.totalorder %s523_s15, 1  ;;  %p140_p8 = scmp.lt.s32.totalorder %s523_s15, 3 }
   0xc   : > { %p141_p9 = pnand %p388_p7, %p140_p8 }
   0xd   : > { %p164_p10 = scmp.lt.s32.totalorder (!%p141_p9), %s574_s16, 1  ;;  %v182_v0 = vlaneseq (!%p141_p9)  ;;  %v525_v1 = vmov (!%p141_p9), 1983009808   ;;  %s526_s29 = smov (!%p141_p9), 126   ;;  %v459_v11 = vld [vmem:[%s674_s1] sm:$0xff] (!%p141_p9)   ;;  %vm248_vm0 = vcmask (!%p141_p9), 130048  }
   0xe   : > { %144 = sbr.rel (%p141_p9) target bundleno = 393 (0x189), region = 32  ;;  %v180_v2 = vunpack.c.l.s4 (!%p141_p9), %v525_v1  ;;  %s527_s5 = smov (!%p141_p9), 127   ;;  %404 = vmatprep.mubr.msk.bf16.mxu0 (!%p141_p9), %vm248_vm0, %v459_v11  ;;  %v528_v13 = vmov (!%p141_p9), 0   ;;  %v174_v15 = vld [vmem:[%s675_s2 + $0x8] sm:$0xff] (!%p141_p9)  ;;  %v173_v16 = vld [vmem:[%s675_s2] sm:$0xff] (!%p141_p9)  ;;  %v175_v17 = vld [vmem:[%s675_s2 + $0x10] sm:$0xff] (!%p141_p9) }
   0xf   : > { %v183_v3 = vshrl.u32 (!%p141_p9), %v182_v0, 7  ;;  %456 = vset.pattern.permute.xlu0 (!%p141_p9), %v528_v13  ;;  %457 = vset.pattern.permute.xlu1 (!%p141_p9), %v528_v13  ;;  %s529_s6 = smov (!%p141_p9), 125   ;;  %vm198_vm1 = vcmask (!%p141_p9), 1039360   ;;  %vm214_vm2 = vcmask (!%p141_p9), 1041408   ;;  %vm205_vm3 = vcmask (!%p141_p9), 1031168   ;;  %s409_s26 = smul.u32 (!%p141_p9), 384, %s574_s16 }
  0x10   : > { %v181_v4 = vunpack.c.0.s8 (!%p141_p9), %v180_v2  ;;  %vm212_vm4 = vcmask (!%p141_p9), 1022976   ;;  %vm218_vm5 = vcmask (!%p141_p9), 1043456   ;;  %vm221_vm6 = vcmask (!%p141_p9), 1045504   ;;  %v460_v30 = vld [vmem:[%s674_s1 + $0x8] ss:$0 sps:$4 sm:$0xff] (!%p141_p9)  }
  0x11   : > { %s630_s4 = scalar_lea.hbm (!%p141_p9), %s676_s3, %s409_s26 }
  0x12   : > { %v184_v5 = vsub.s32 (!%p141_p9), %v181_v4, %v183_v3 }
  0x15   : > { %s165_s24 = scalar_select %p164_p10, %s574_s16, 1 }
  0x17   : > { %s398_s25 = sshll.u32 %s165_s24, 2  ;;  %s161_s24 = sand.u32 1, %s515_s13  }
  0x18   : > { %s168_s28 = scalar_lea.vmem %s673_s0, %s398_s25  ;;  %s408_s25 = smul.u32 24, %s161_s24 }
  0x19   : > { %v176_v6 = vld [vmem:[%s168_s28] sm:$0xf]  ;;  %s632_s16 = scalar_lea.sflag [#allocation3], %s161_s24 }
  0x1a   : > { %v192_v7 = vrot.slane %v176_v6, %v184_v5  ;;  %v178_v8 = vcombine.low %v176_v6, %v176_v6  ;;  %s163_s27 = scalar_lea.vmem [#allocation2], %s408_s25 }
  0x1b   : > { %s323_s28 = sshll.u32 %s163_s27, 4  ;;  %s625_s28 = int_to_ptr.vmem [resolvable:$true] %s323_s28 }
  0x1c   : > { %203 = vrot.lane.b32.xlu1 %v192_v7, %s526_s29  ;;  %v185_v9 = vrot.slane %v178_v8, %v184_v5  ;;  %v200_v10 = vcombine.low %v192_v7, %v192_v7 }
  0x1e   : > { %194 = vrot.lane.b32.xlu0 %v185_v9, %s527_s5  ;;  %v193_v12 = vcombine.high %v185_v9, %v185_v9  ;;  %v207_v14 = vcombine.low %v185_v9, %v185_v9 }
  0x20   : > { %201 = vrot.lane.b32.xlu1 %v200_v10, %s526_s29 }
  0x22   : > { %196 = vrot.lane.b32.xlu0 %v193_v12, %s527_s5  ;;  %s461_s5 = scalar_lea.vmem %s625_s28, 384 }
  0x23   : > { %p462_p11 = scmp.ne.s32.totalorder %s625_s28, %s461_s5 }
  0x24   : > { %210 = vrot.lane.b32.xlu1 %v185_v9, %s529_s6 }
  0x25   : > { %p463_p12 = pnand %p462_p11, %p591_p5 }
  0x26   : > { %208 = vrot.lane.b32.xlu0 %v207_v14, %s529_s6  ;;  %s530_s6 = smov [#allocation2]  }
  0x27   : > { %p464_p13 = pneg %p463_p12  ;;  %s465_s7 = sshll.u32 %s530_s6, 4  ;;  %s466_s7 = int_to_ptr.vmem [resolvable:$false] %s465_s7 }
  0x28   : > { %232 = vperm.xlu1 %457, %v174_v15   ;;  %s467_s8 = scalar_lea.vmem %s466_s7, 768  ;;  %p468_p0 = scmp.lt.s32.totalorder %s625_s28, %s466_s7 }
  0x29   : > { %p469_p1 = scmp.lt.s32.totalorder %s467_s8, %s461_s5 }
  0x2a   : > { %227 = vperm.xlu0 %456, %v173_v16  }
  0x2b   : > { %p470_p2 = por %p469_p1, %p468_p0 }
  0x2c   : > { %237 = vperm.xlu1 %457, %v175_v17  }
  0x2d   : > { %p471_p3 = pnand %p470_p2, %p464_p13 }
  0x8e   : > { %v204_v18 = vpop.permute.xlu1 %203 }
  0x90   : > { %v195_v19 = vpop.permute.xlu0 %194 }
  0x92   : > { %v202_v20 = vpop.permute.xlu1 %201 }
  0x93   : > { %v206_v25 = vsel %vm205_vm3, %v202_v20, %v204_v18 }
  0x94   : > { %v197_v21 = vpop.permute.xlu0 %196 }
  0x95   : > { %v199_v22 = vsel %vm198_vm1, %v195_v19, %v197_v21 }
  0x96   : > { %v217_v23 = vsel %vm214_vm2, %v176_v6, %v199_v22  ;;  %v211_v24 = vpop.permute.xlu1 %210 }
  0x97   : > { %v220_v28 = vsel %vm218_vm5, %v217_v23, %v206_v25 }
  0x98   : > { %v209_v26 = vpop.permute.xlu0 %208 }
  0x99   : > { %v213_v27 = vsel %vm212_vm4, %v209_v26, %v211_v24 }
  0x9a   : > { %v223_v29 = vsel %vm221_vm6, %v220_v28, %v213_v27 }
  0x9b   : > { %402 = vmatprep.subr.bf16.mxu0 %v223_v29 }
  0x9c   : > { %403 = vmatpush3.bf16.msra.mxu0 %v223_v29 }
  0x9f   : > { %405 = vmatmul.mubr.msk.bf16.vlgmr.msra.gmra.mrb[0].mxu0 %vm248_vm0, %v460_v30 }
  0xa7   : > { %v233_v31 = vpop.permute.xlu1 %232 }
  0xa9   : > { %v228_v33 = vpop.permute.xlu0 %227 }
  0xab   : > { %v238_v32 = vpop.permute.xlu1 %237 }
 0x172   : > { %v406_v34 = vpop.f32.mrb[0].mxu0 }
 0x173   : > { %v298_v35 = vadd.f32 %v406_v34, %v238_v32  ;;  %v289_v36 = vpop.f32.mrb[1].mxu0 }
 0x174   : > { %v290_v37 = vadd.f32 %v289_v36, %v228_v33  ;;  %v407_v38 = vpop.f32.mrb[2].mxu0 }
 0x175   : > { %v305_v39 = vmax.f32 %v298_v35, 0.0  ;;  %v292_v40 = vpop.f32.mrb[3].mxu0 }
 0x176   : > { %v303_v41 = vmax.f32 %v290_v37, 0.0  ;;  %v293_v42 = vadd.f32 %v292_v40, %v233_v31 }
 0x177   : > { %308 = vst [vmem:[%s163_s27 + $0x10] sm:$0xff] %v305_v39 }
 0x178   : > { %306 = vst [vmem:[%s163_s27] sm:$0xff] %v303_v41  ;;  %v304_v43 = vmax.f32 %v293_v42, 0.0 }
 0x17a   : > { %307 = vst [vmem:[%s163_s27 + $0x8] sm:$0xff] %v304_v43 }
 0x17b   : > { %474 = shalt.err (!%p471_p3)
}
 0x17c   : > { %s475_s9 = scalar_lea.hbm %s630_s4, 384  ;;  %s479_s17 = scalar_lea.hbm %s676_s3, 768 }
 0x17d   : > { %p476_p4 = scmp.ne.s32.totalorder %s630_s4, %s475_s9  ;;  %p480_p9 = scmp.lt.u32.totalorder %s630_s4, %s676_s3 }
 0x17e   : > { %p481_p10 = scmp.lt.u32.totalorder %s479_s17, %s475_s9  ;;  %p483_p12 = scmp.lt.u32.totalorder %s475_s9, %s630_s4 }
 0x17f   : > { %p477_p7 = pnand %p476_p4, %p591_p5 }
 0x180   : > { %p482_p11 = por %p481_p10, %p480_p9 }
 0x181   : > { %p478_p8 = pneg %p477_p7 }
 0x182   : > { %p484_p13 = por %p483_p12, %p482_p11 }
 0x184   : > { %p485_p0 = pnand %p484_p13, %p478_p8 }
 0x186   : > { %488 = shalt.err (!%p485_p0)
}
 0x187   : > { %s531_s24 = smov 128   ;;  %s532_s25 = smov 8  }
 0x188   : > { %410 = dma.vmem_to_hbm [thread:$0]  (%p591_p5), %s625_s28, 384, %s630_s4, %s632_s16, %s531_s24, %s531_s24, %s532_s25  }
 0x189 PF: > { %p416_p1 = scmp.ge.s32.totalorder %s523_s15, 2  ;;  %s338_s26 = sand.u32 1, %s511_s12  }
 0x18a   : > { %s339_s27 = scalar_lea.sflag [#allocation3], %s338_s26 }
 0x18b   : > { %p413_p2 = pnand %p416_p1, %p595_p6 }
 0x18d   : > { %506 = dma.done.wait (!%p413_p2), %s339_s27, 384  }
 0x18e   : > { %508 = vsyncadd (!%p413_p2), %s339_s27, 4294966912  ;;  %p13_p3 = scmp.ge.s32.totalorder %s578_s18, 4   ;;  %s679_s12 = smov %s515_s13 }
 0x18f   : > { %s680_s13 = smov %s519_s14  ;;  %s681_s14 = smov %s589_s21 }
 0x190   : > { %s682_s15 = smov %s578_s18  ;;  %15 = sbr.rel (!%p13_p3) target bundleno = 3 (0x3), region = 67 }
 0x197   :  { %344 = vsyncpa [#allocation3], 1 }
 0x198   :  { %346 = vsyncpa [#allocation3 + $0x1], 1 }

</bundles_post_ra>
